<compile_context>
chip_gen: v5e
topology: v5e:2x2
jax: 0.10.0
libtpu: 0.0.40
codegen_flags: <defaults>
</compile_context>

<pallas_src>
import functools

import jax
import jax.numpy as jnp
from jax.experimental import pallas as pl
from jax.experimental.pallas import tpu as pltpu


def _actionnet_kernel(x_ref, w1_ref, w2_ref, o_ref, *, action_range):
    x = x_ref[...]                                    # (tile_b, F)   bf16
    w1 = w1_ref[...]                                  # (F, Hpad)     bf16
    w2 = w2_ref[...]                                  # (1, Hpad)     f32

    # Layer 1 on the MXU: bf16 operands, f32 accumulate.
    h = jnp.dot(x, w1, preferred_element_type=jnp.float32)    # (tile_b, Hpad)
    h = jnp.maximum(h, 0.0)                                    # ReLU (VPU, f32)

    # Layer 2 has a single output unit. Contract over the hidden axis with the
    # batch axis landing on lanes: the result is a lane-dense (1, tile_b) row,
    # so the output store is a full-width vst (no masked 1-lane column write).
    y = jnp.dot(w2, h.T, preferred_element_type=jnp.float32)  # (1, tile_b)

    # tanh on the EUP, scale on the VPU, all f32.
    o_ref[...] = jnp.tanh(y) * jnp.float32(action_range)


def _round_up(x, m):
    return ((x + m - 1) // m) * m


@functools.partial(jax.jit, static_argnames=("action_range",))
def action_net_forward(features, w1, w2, *, action_range):
    """features: (B, F) f32; w1: (F, H) f32 (pre-transposed vs torch);
    w2: (H, 1) f32. Returns (B, 1) f32."""
    B, F = features.shape
    Fw, H = w1.shape
    assert F == Fw and w2.shape == (H, 1)

    LANES = 128

    # ---- layout prep (cheap one-time XLA ops) -------------------------------
    # Pad hidden dim to a lane-aligned width; narrow matmul operands to bf16.
    Hpad = _round_up(H, LANES)
    w1_p = jnp.zeros((F, Hpad), jnp.bfloat16).at[:, :H].set(w1.astype(jnp.bfloat16))
    w2_row = jnp.zeros((1, Hpad), jnp.float32).at[0, :H].set(w2[:, 0])

    # Batch tile: multiple of 128 (lane-dense output, sublane-aligned input),
    # bounded by a VMEM budget that comfortably fits v7x's 32 MiB scoped
    # default counting 2x double-buffering of the bf16 feature tile.
    vmem_budget = 8 * 1024 * 1024                         # bytes for x buffers
    budget_rows = (vmem_budget // (2 * 2 * F)) // LANES * LANES
    tile_b = max(LANES, min(2048, budget_rows, _round_up(B, LANES)))
    B_pad = _round_up(B, tile_b)
    grid = (B_pad // tile_b,)

    x_p = jnp.zeros((B_pad, F), jnp.bfloat16).at[:B, :].set(
        features.astype(jnp.bfloat16))

    kernel = functools.partial(_actionnet_kernel,
                               action_range=float(action_range))

    cost = pl.CostEstimate(
        flops=2 * B_pad * F * Hpad + 2 * B_pad * Hpad,
        transcendentals=B_pad,
        bytes_accessed=x_p.size * 2 + w1_p.size * 2 + w2_row.size * 4 + B_pad * 4,
    )

    out_row = pl.pallas_call(
        kernel,
        out_shape=jax.ShapeDtypeStruct((1, B_pad), jnp.float32),
        grid=grid,
        in_specs=[
            # Feature tile: streamed / double-buffered along the batch grid.
            pl.BlockSpec((tile_b, F), lambda i: (i, 0)),
            # Weights: constant block index -> DMA'd once, resident in VMEM.
            pl.BlockSpec((F, Hpad), lambda i: (0, 0)),
            pl.BlockSpec((1, Hpad), lambda i: (0, 0)),
        ],
        out_specs=pl.BlockSpec((1, tile_b), lambda i: (0, i)),
        compiler_params=pltpu.CompilerParams(
            dimension_semantics=("parallel",),
        ),
        cost_estimate=cost,
    )(x_p, w1_p, w2_row)

    # Back to the PyTorch (B, 1) layout; drop batch padding (padded rows are 0).
    return out_row[0, :B].reshape(B, 1)


def init_params(key, feature_len, hidden=30):
    """nn.Linear-style U(-1/sqrt(fan_in), 1/sqrt(fan_in)) init.

    Weights returned as (in, out) — i.e. already transposed vs PyTorch's (out, in).
    """
    k1, k2 = jax.random.split(key)
    b1 = 1.0 / jnp.sqrt(jnp.float32(feature_len))
    b2 = 1.0 / jnp.sqrt(jnp.float32(hidden))
    w1 = jax.random.uniform(k1, (feature_len, hidden), jnp.float32, -b1, b1)
    w2 = jax.random.uniform(k2, (hidden, 1), jnp.float32, -b2, b2)
    return w1, w2


if __name__ == "__main__":
    key = jax.random.PRNGKey(0)
    k_x, k_p = jax.random.split(key)

    batch = 8
    feature_len = 32
    action_range = 2.0

    features = jax.random.normal(k_x, (batch, feature_len), jnp.float32)
    w1, w2 = init_params(k_p, feature_len)

    out = action_net_forward(features, w1, w2, action_range=action_range)
    out = jax.block_until_ready(out)

    # Pure-JAX f32 reference (same semantics as the PyTorch forward).
    ref = jnp.tanh(jnp.maximum(features @ w1, 0.0) @ w2) * action_range
    assert out.shape == (batch, 1)
    # bf16 matmul operands (f32 accumulate) -> tolerance relaxed vs pure f32.
    assert jnp.allclose(out, ref, atol=2e-2, rtol=2e-2), "mismatch vs reference"

    print("KERNEL_OK")
</pallas_src>

<mosaic_0001>
module attributes {stable_mosaic.version = 11 : i64} {
  func.func @_actionnet_kernel(%arg0: i32, %arg1: memref<128x32xbf16, #tpu.memory_space<vmem>>, %arg2: memref<32x128xbf16, #tpu.memory_space<vmem>>, %arg3: memref<1x128xf32, #tpu.memory_space<vmem>>, %arg4: memref<1x128xf32, #tpu.memory_space<vmem>>) attributes {dimension_semantics = [#tpu.dimension_semantics<parallel>], iteration_bounds = array<i64: 1>, scalar_prefetch = 0 : i64, scratch_operands = 0 : i64, tpu.core_type = #tpu.core_type<tc>, window_params = [{transform_indices = @transform_0, window_bounds = array<i64: 128, 32>}, {pipeline_mode = #tpu.pipeline_mode<synchronous>, transform_indices = @transform_1, window_bounds = array<i64: 32, 128>}, {pipeline_mode = #tpu.pipeline_mode<synchronous>, transform_indices = @transform_2, window_bounds = array<i64: 1, 128>}, {transform_indices = @transform_3, window_bounds = array<i64: 1, 128>}]} {
    %c0 = arith.constant 0 : index
    %c0_0 = arith.constant 0 : index
    %0 = vector.load %arg1[%c0, %c0_0] : memref<128x32xbf16, #tpu.memory_space<vmem>>, vector<128x32xbf16>
    %c0_1 = arith.constant 0 : index
    %c0_2 = arith.constant 0 : index
    %1 = vector.load %arg2[%c0_1, %c0_2] : memref<32x128xbf16, #tpu.memory_space<vmem>>, vector<32x128xbf16>
    %c0_3 = arith.constant 0 : index
    %c0_4 = arith.constant 0 : index
    %2 = vector.load %arg3[%c0_3, %c0_4] : memref<1x128xf32, #tpu.memory_space<vmem>>, vector<1x128xf32>
    %cst = arith.constant dense<0.000000e+00> : vector<128x128xf32>
    %3 = tpu.matmul %0, %1, %cst {dimension_numbers = #tpu.dot_dimension_numbers<[1], [0], [0], [1], [0, 0, 1, 1], [], []>} : vector<128x32xbf16>, vector<32x128xbf16>, vector<128x128xf32> -> vector<128x128xf32>
    %cst_5 = arith.constant 0.000000e+00 : f32
    %4 = vector.broadcast %cst_5 : f32 to vector<128x128xf32>
    %5 = arith.maximumf %3, %4 : vector<128x128xf32>
    %6 = tpu.transpose %5, [1, 0] : vector<128x128xf32> -> vector<128x128xf32>
    %cst_6 = arith.constant dense<0.000000e+00> : vector<1x128xf32>
    %7 = tpu.matmul %2, %6, %cst_6 {dimension_numbers = #tpu.dot_dimension_numbers<[1], [0], [0], [1], [0, 0, 1, 1], [], []>} : vector<1x128xf32>, vector<128x128xf32>, vector<1x128xf32> -> vector<1x128xf32>
    %8 = math.tanh %7 : vector<1x128xf32>
    %cst_7 = arith.constant 2.000000e+00 : f32
    %9 = vector.broadcast %cst_7 : f32 to vector<1x128xf32>
    %10 = arith.mulf %8, %9 : vector<1x128xf32>
    %c0_8 = arith.constant 0 : index
    %c0_9 = arith.constant 0 : index
    %11 = vector.load %arg4[%c0_8, %c0_9] : memref<1x128xf32, #tpu.memory_space<vmem>>, vector<1x128xf32>
    tpu.vector_store %arg4[%c0_8, %c0_9], %10 {strides = array<i32>} : memref<1x128xf32, #tpu.memory_space<vmem>>, vector<1x128xf32>,
    return
  }
  func.func @transform_0(%arg0: i32) -> (i32, i32) {
    %c0_i32 = arith.constant 0 : i32
    %c0_i32_0 = arith.constant 0 : i32
    return %arg0, %c0_i32 : i32, i32
  }
  func.func @transform_1(%arg0: i32) -> (i32, i32) {
    %c0_i32 = arith.constant 0 : i32
    %c0_i32_0 = arith.constant 0 : i32
    %c0_i32_1 = arith.constant 0 : i32
    return %c0_i32, %c0_i32_0 : i32, i32
  }
  func.func @transform_2(%arg0: i32) -> (i32, i32) {
    %c0_i32 = arith.constant 0 : i32
    %c0_i32_0 = arith.constant 0 : i32
    %c0_i32_1 = arith.constant 0 : i32
    return %c0_i32, %c0_i32_0 : i32, i32
  }
  func.func @transform_3(%arg0: i32) -> (i32, i32) {
    %c0_i32 = arith.constant 0 : i32
    %c0_i32_0 = arith.constant 0 : i32
    return %c0_i32, %arg0 : i32, i32
  }
}

</mosaic_0001>

<bundles_post_ra>
// kernel: action_net_forward.1
= control target key start
LH: loop header
LB: loop body
LE: loop exit
PB: predicated region body
PF: predicated region fallthrough
CT: control target
= control target key end

     0   :  { %vm88_vm0 = vcmask 261120   ;;  %s325_s1 = inlined_call_operand.vmem [shape: bf16[32,128], index: 1, kind: input, shape index: {}]   ;;  %s326_s0 = inlined_call_operand.vmem [shape: bf16[128,32], index: 0, kind: input, shape index: {}]   ;;  %s327_s2 = inlined_call_operand.vmem [shape: f32[1,128], index: 2, kind: input, shape index: {}]   ;;  %s328_s3 = inlined_call_operand.vmem [shape: f32[1,128], index: 3, kind: output, shape index: {}]  }
   0x1   :  { %v262_v0 = vld [vmem:[%s325_s1 + $0x8] sm:$0xff]  ;;  %v261_v1 = vld [vmem:[%s325_s1] sm:$0xff]  ;;  %v256_v2 = vld [vmem:[%s326_s0 + $0x18] sm:$0xff] }
   0x2   :  { %263 = vmatpush.bf16.msra.mxu2 %v262_v0  ;;  %264 = vmatpush.bf16.msra.mxu3 %v262_v0  ;;  %v259_v3 = vld [vmem:[%s326_s0 + $0x30] sm:$0xff]  ;;  %v253_v4 = vld [vmem:[%s326_s0] sm:$0xff]  ;;  %v260_v6 = vld [vmem:[%s326_s0 + $0x38] sm:$0xff] }
   0x3   :  { %119 = vmatpush.bf16.msra.mxu0 %v262_v0  ;;  %v257_v5 = vld [vmem:[%s326_s0 + $0x20] sm:$0xff]  ;;  %v254_v7 = vld [vmem:[%s326_s0 + $0x8] sm:$0xff]  ;;  %v255_v9 = vld [vmem:[%s326_s0 + $0x10] sm:$0xff] }
   0x4   :  { %v258_v8 = vld [vmem:[%s326_s0 + $0x28] sm:$0xff]  ;;  %v35_v42 = vld [vmem:[%s327_s2] sm:$0x1] }
   0x6   :  { %265 = vmatpush.bf16.msra.mxu2 %v261_v1  ;;  %266 = vmatpush.bf16.msra.mxu3 %v261_v1 }
   0x7   :  { %120 = vmatpush.bf16.msra.mxu0 %v261_v1 }
   0x9   :  { %248 = vmatmul.msk.bf16.vlgmr.msra.gmra.mxu2 %vm88_vm0, %v256_v2  ;;  %251 = vmatmul.msk.bf16.vlgmr.msra.gmra.mxu3 %vm88_vm0, %v259_v3 }
   0xa   :  { %245 = vmatmul.msk.bf16.vlgmr.msra.gmra.mxu0 %vm88_vm0, %v253_v4 }
  0x19   :  { %249 = vmatmul.msk.bf16.gmra.mxu2 %vm88_vm0, %v257_v5  ;;  %252 = vmatmul.msk.bf16.gmra.mxu3 %vm88_vm0, %v260_v6 }
  0x1a   :  { %246 = vmatmul.msk.bf16.gmra.mxu0 %vm88_vm0, %v254_v7 }
  0x29   :  { %250 = vmatmul.msk.bf16.gmra.mxu2 %vm88_vm0, %v258_v8 }
  0x2a   :  { %247 = vmatmul.msk.bf16.gmra.mxu0 %vm88_vm0, %v255_v9 }
  0x87   :  { %v122_v14 = vpop.f32.mrf.mxu0 }
  0x88   :  { %v162_v41 = vmax.f32 %v122_v14, 0.0 }
  0x8c   :  { %v137_v10 = vpop.f32.mrf.mxu2  ;;  %v152_v11 = vpop.f32.mrf.mxu3 }
  0x8d   :  { %v174_v25 = vmax.f32 %v152_v11, 0.0  ;;  %v168_v34 = vmax.f32 %v137_v10, 0.0 }
  0x8f   :  { %v124_v17 = vpop.f32.mrf.mxu0 }
  0x90   :  { %v163_v40 = vmax.f32 %v124_v17, 0.0 }
  0x94   :  { %v139_v12 = vpop.f32.mrf.mxu2  ;;  %v154_v13 = vpop.f32.mrf.mxu3 }
  0x95   :  { %v175_v24 = vmax.f32 %v154_v13, 0.0  ;;  %v169_v33 = vmax.f32 %v139_v12, 0.0 }
  0x97   :  { %v127_v22 = vpop.f32.mrf.mxu0 }
  0x98   :  { %v164_v39 = vmax.f32 %v127_v22, 0.0 }
  0x9c   :  { %v142_v15 = vpop.f32.mrf.mxu2  ;;  %v157_v16 = vpop.f32.mrf.mxu3 }
  0x9d   :  { %v176_v21 = vmax.f32 %v157_v16, 0.0  ;;  %v170_v32 = vmax.f32 %v142_v15, 0.0 }
  0x9f   :  { %v129_v28 = vpop.f32.mrf.mxu0 }
  0xa0   :  { %v165_v38 = vmax.f32 %v129_v28, 0.0 }
  0xa4   :  { %v144_v18 = vpop.f32.mrf.mxu2  ;;  %v159_v19 = vpop.f32.mrf.mxu3 }
  0xa5   :  { %v177_v20 = vmax.f32 %v159_v19, 0.0  ;;  %v171_v30 = vmax.f32 %v144_v18, 0.0 }
  0xa7   :  { %178 = vmatpush.xpose.msra.mxu1 %v177_v20  ;;  %v132_v31 = vpop.f32.mrf.mxu0 }
  0xa8   :  { %v166_v37 = vmax.f32 %v132_v31, 0.0 }
  0xab   :  { %179 = vmatpush.xpose.msra.mxu1 %v176_v21 }
  0xac   :  { %v147_v23 = vpop.f32.mrf.mxu2 }
  0xad   :  { %v172_v29 = vmax.f32 %v147_v23, 0.0 }
  0xaf   :  { %180 = vmatpush.xpose.msra.mxu1 %v175_v24  ;;  %v134_v35 = vpop.f32.mrf.mxu0 }
  0xb0   :  { %v167_v36 = vmax.f32 %v134_v35, 0.0 }
  0xb3   :  { %181 = vmatpush.xpose.msra.mxu1 %v174_v25 }
  0xb4   :  { %v149_v26 = vpop.f32.mrf.mxu2 }
  0xb5   :  { %v173_v27 = vmax.f32 %v149_v26, 0.0 }
  0xb7   :  { %182 = vmatpush.xpose.msra.mxu1 %v173_v27 }
  0xbb   :  { %183 = vmatpush.xpose.msra.mxu1 %v172_v29 }
  0xbf   :  { %184 = vmatpush.xpose.msra.mxu1 %v171_v30 }
  0xc3   :  { %185 = vmatpush.xpose.msra.mxu1 %v170_v32 }
  0xc7   :  { %186 = vmatpush.xpose.msra.mxu1 %v169_v33 }
  0xcb   :  { %187 = vmatpush.xpose.msra.mxu1 %v168_v34 }
  0xcf   :  { %188 = vmatpush.xpose.msra.mxu1 %v167_v36 }
  0xd3   :  { %189 = vmatpush.xpose.msra.mxu1 %v166_v37 }
  0xd7   :  { %190 = vmatpush.xpose.msra.mxu1 %v165_v38 }
  0xdb   :  { %191 = vmatpush.xpose.msra.mxu1 %v164_v39 }
  0xdf   :  { %192 = vmatpush.xpose.msra.mxu1 %v163_v40 }
  0xe3   :  { %193 = vmatpush.xpose.msra.mxu1 %v162_v41 }
  0xe6   :  { %194 = vmatmul.f32.vlgmr.msra.gmra.mxu1 %v35_v42 }
 0x163   :  { %v195_v43 = vpop.f32.mrf.mxu1 }
 0x164   :  { %267 = vtanh.f32 %v195_v43 }
 0x16a   :  { %v268_v44 = vpop.eup %267 }
 0x16b   :  { %v199_v45 = vmul.f32 2.0, %v268_v44 }
 0x16d   :  { %200 = vst [vmem:[%s328_s3] sm:$0x1] %v199_v45 }

</bundles_post_ra>
